<compile_context>
chip_gen: v5e
topology: v5e:2x2
jax: 0.10.0
libtpu: 0.0.40
codegen_flags: <defaults>
</compile_context>

<pallas_src>
import math

import jax
import jax.numpy as jnp
from jax import lax
from jax.experimental import pallas as pl
from jax.experimental.pallas import tpu as pltpu

LANE = 128
SUBLANE = 8


def _round_up(x, m):
    return (x + m - 1) // m * m


def _pick_row_tile(n_rows, in_f, out_pad, budget_bytes=24 * 1024 * 1024):
    """Largest TM <= 512 whose double-buffered tiles fit the VMEM budget."""
    fixed = 2 * out_pad * in_f * 2 + 2 * out_pad * 4          # W (bf16) + bias (f32)
    per_row = 2 * in_f * 2 + 2 * out_pad * 4                  # x (bf16) + out (f32), 2 bufs
    tm = 512
    while tm > SUBLANE and fixed + tm * per_row > budget_bytes:
        tm //= 2
    return max(SUBLANE, min(tm, _round_up(n_rows, SUBLANE)))


def lorentz_linear_kernel(scale_ref, x_ref, w_ref, b_ref, o_ref):
    # scale_ref: (1, 1) f32 SMEM  -- exp(log_scale), precomputed in the wrapper.
    # x_ref:  (TM, in_f)      bf16 row tile
    # w_ref:  (out_pad, in_f) bf16 weight, PyTorch (out, in) layout
    # b_ref:  (1, out_pad)    f32 bias (zero-padded lanes)
    # o_ref:  (TM, out_pad)   f32 output tile
    y = lax.dot_general(
        x_ref[...], w_ref[...],
        dimension_numbers=(((1,), (1,)), ((), ())),   # contract on in_f (x @ W^T)
        preferred_element_type=jnp.float32,
    ) + b_ref[...]

    col = lax.broadcasted_iota(jnp.int32, y.shape, dimension=1)
    is_time = col == 0

    # Time column (lane 0) via a masked XLU reduction (no unaligned lane slice).
    time_raw = jnp.sum(jnp.where(is_time, y, 0.0), axis=-1, keepdims=True)
    time = jax.nn.sigmoid(time_raw) * scale_ref[0, 0] + 1.1

    # ||narrow||^2 = ||y||^2 - y0^2  (zero-padded lanes contribute exactly 0).
    sum_sq = jnp.sum(y * y, axis=-1, keepdims=True)
    narrow_sq = jnp.maximum(sum_sq - time_raw * time_raw, 1e-8)
    s = (time * time - 1.0) * pl.reciprocal(narrow_sq, approx=True)

    o_ref[...] = jnp.where(is_time, time, y * jnp.sqrt(s)).astype(o_ref.dtype)


def lorentz_linear(x, weight, bias, log_scale):
    """weight: (out_features, in_features)  (PyTorch nn.Linear convention)."""
    # TODO(synk): training-mode dropout (p=0.1) and the optional nonlin hook are
    # identity / None at inference and are not modeled in the kernel.
    # TODO(synk): for very large in_features (>= ~2K) add a K grid axis with an
    # f32 VMEM accumulator and pl.when-gated epilogue; not needed at these sizes.
    orig_shape = x.shape
    in_f = orig_shape[-1]
    out_f = weight.shape[0]
    out_pad = _round_up(out_f, LANE)

    xf = x.reshape(-1, in_f).astype(jnp.bfloat16)
    n_rows = xf.shape[0]

    w_lo = jnp.asarray(weight, jnp.bfloat16)                    # (out_f, in_f)
    if out_pad != out_f:
        w_lo = jnp.pad(w_lo, ((0, out_pad - out_f), (0, 0)))
    b2 = jnp.pad(jnp.asarray(bias, jnp.float32).reshape(1, out_f),
                 ((0, 0), (0, out_pad - out_f)))
    sc = jnp.exp(jnp.asarray(log_scale, jnp.float32)).reshape(1, 1)

    tm = _pick_row_tile(n_rows, in_f, out_pad)
    n_pad = _round_up(n_rows, tm)
    if n_pad != n_rows:
        xf = jnp.pad(xf, ((0, n_pad - n_rows), (0, 0)))

    vmem_need = (2 * out_pad * in_f * 2 + 2 * out_pad * 4
                 + tm * (2 * in_f * 2 + 2 * out_pad * 4))

    out = pl.pallas_call(
        lorentz_linear_kernel,
        out_shape=jax.ShapeDtypeStruct((n_pad, out_pad), jnp.float32),
        grid_spec=pl.GridSpec(
            grid=(n_pad // tm,),
            in_specs=[
                pl.BlockSpec(memory_space=pltpu.MemorySpace.SMEM),   # exp(scale)
                pl.BlockSpec((tm, in_f), lambda i: (i, 0)),          # x row tile
                pl.BlockSpec((out_pad, in_f), lambda i: (0, 0)),     # weight (resident)
                pl.BlockSpec((1, out_pad), lambda i: (0, 0)),        # bias (resident)
            ],
            out_specs=pl.BlockSpec((tm, out_pad), lambda i: (i, 0)),
        ),
        compiler_params=pltpu.CompilerParams(
            dimension_semantics=("parallel",),
            vmem_limit_bytes=int(max(32 << 20, vmem_need + (4 << 20))),
        ),
        cost_estimate=pl.CostEstimate(
            flops=2 * n_pad * in_f * out_pad,
            transcendentals=3 * n_pad,
            bytes_accessed=(n_pad * in_f * 2 + out_pad * in_f * 2
                            + out_pad * 4 + n_pad * out_pad * 4),
        ),
    )(sc, xf, w_lo, b2)

    out = out[:n_rows, :out_f]
    return out.reshape(orig_shape[:-1] + (out_f,))


def init_params(key, in_features, out_features, scale=10.0):
    """Deterministic parameter init mirroring LorentzLinear.reset_parameters."""
    stdv = 1.0 / math.sqrt(out_features)
    w = jax.random.uniform(key, (out_features, in_features), jnp.float32,
                           minval=-stdv, maxval=stdv)
    # reset_parameters zeroes input column idx 0 (step = in_features -> only idx 0).
    w = w.at[:, 0].set(0.0)
    b = jnp.zeros((out_features,), jnp.float32)
    log_scale = jnp.array(math.log(scale), jnp.float32)
    return w, b, log_scale


def reference(x, weight, bias, log_scale):
    """Pure-JAX reference of the PyTorch forward (eval mode)."""
    y = x @ weight.T + bias
    time = jax.nn.sigmoid(y[..., 0:1]) * jnp.exp(log_scale) + 1.1
    narrow = y[..., 1:]
    s = (time * time - 1.0) / jnp.maximum(
        jnp.sum(narrow * narrow, axis=-1, keepdims=True), 1e-8)
    return jnp.concatenate([time, narrow * jnp.sqrt(s)], axis=-1)


if __name__ == "__main__":
    batch, seq, in_features, out_features = 2, 8, 32, 32

    key = jax.random.PRNGKey(0)
    kx, kw = jax.random.split(key)
    x = jax.random.normal(kx, (batch, seq, in_features), jnp.float32)
    w, b, log_scale = init_params(kw, in_features, out_features, scale=10.0)

    out = jax.jit(lorentz_linear)(x, w, b, log_scale)
    out = jax.block_until_ready(out)

    # Compare against the reference evaluated on the same bf16-quantized operands
    # (the kernel feeds the MXU bf16, accumulates in f32, and uses an approx EUP
    # reciprocal in the epilogue -> tolerance loosened accordingly).
    xq = x.astype(jnp.bfloat16).astype(jnp.float32)
    wq = w.astype(jnp.bfloat16).astype(jnp.float32)
    ref = reference(xq, wq, b, log_scale)

    assert out.shape == (batch, seq, out_features)
    assert jnp.allclose(out, ref, atol=1e-2, rtol=1e-2), "mismatch vs reference"

    print("KERNEL_OK")
</pallas_src>

<mosaic_0001>
module attributes {stable_mosaic.version = 11 : i64} {
  func.func @lorentz_linear_kernel(%arg0: i32, %arg1: memref<1x1xf32, #tpu.memory_space<smem>>, %arg2: memref<16x32xbf16, #tpu.memory_space<vmem>>, %arg3: memref<128x32xbf16, #tpu.memory_space<vmem>>, %arg4: memref<1x128xf32, #tpu.memory_space<vmem>>, %arg5: memref<16x128xf32, #tpu.memory_space<vmem>>) attributes {dimension_semantics = [#tpu.dimension_semantics<parallel>], iteration_bounds = array<i64: 1>, scalar_prefetch = 0 : i64, scratch_operands = 0 : i64, tpu.core_type = #tpu.core_type<tc>, window_params = [{transform_indices = @transform_0, window_bounds = array<i64: 1, 1>}, {transform_indices = @transform_1, window_bounds = array<i64: 16, 32>}, {pipeline_mode = #tpu.pipeline_mode<synchronous>, transform_indices = @transform_2, window_bounds = array<i64: 128, 32>}, {pipeline_mode = #tpu.pipeline_mode<synchronous>, transform_indices = @transform_3, window_bounds = array<i64: 1, 128>}, {transform_indices = @transform_4, window_bounds = array<i64: 16, 128>}]} {
    %c0 = arith.constant 0 : index
    %c0_0 = arith.constant 0 : index
    %0 = vector.load %arg2[%c0, %c0_0] : memref<16x32xbf16, #tpu.memory_space<vmem>>, vector<16x32xbf16>
    %c0_1 = arith.constant 0 : index
    %c0_2 = arith.constant 0 : index
    %1 = vector.load %arg3[%c0_1, %c0_2] : memref<128x32xbf16, #tpu.memory_space<vmem>>, vector<128x32xbf16>
    %cst = arith.constant dense<0.000000e+00> : vector<16x128xf32>
    %2 = tpu.matmul %0, %1, %cst {dimension_numbers = #tpu.dot_dimension_numbers<[1], [1], [0], [0], [0, 0, 1, 0], [], []>} : vector<16x32xbf16>, vector<128x32xbf16>, vector<16x128xf32> -> vector<16x128xf32>
    %c0_3 = arith.constant 0 : index
    %c0_4 = arith.constant 0 : index
    %3 = vector.load %arg4[%c0_3, %c0_4] : memref<1x128xf32, #tpu.memory_space<vmem>>, vector<1x128xf32>
    %4 = vector.broadcast %3 : vector<1x128xf32> to vector<16x128xf32>
    %5 = arith.addf %2, %4 : vector<16x128xf32>
    %6 = tpu.iota {dimensions = array<i32: 1>} : vector<16x128xi32>
    %c0_i32 = arith.constant 0 : i32
    %7 = vector.broadcast %c0_i32 : i32 to vector<16x128xi32>
    %8 = arith.cmpi eq, %6, %7 : vector<16x128xi32>
    %cst_5 = arith.constant 0.000000e+00 : f32
    %9 = vector.broadcast %cst_5 : f32 to vector<16x128xf32>
    %10 = arith.select %8, %5, %9 : vector<16x128xi1>, vector<16x128xf32>
    %cst_6 = arith.constant dense<0.000000e+00> : vector<16xf32>
    %11 = vector.multi_reduction <add>, %10, %cst_6 [1] : vector<16x128xf32> to vector<16xf32>
    %12 = vector.shape_cast %11 : vector<16xf32> to vector<16x1xf32>
    %13 = arith.negf %12 : vector<16x1xf32>
    %14 = math.exp %13 : vector<16x1xf32>
    %cst_7 = arith.constant 1.000000e+00 : f32
    %15 = vector.broadcast %cst_7 : f32 to vector<16x1xf32>
    %16 = arith.addf %15, %14 : vector<16x1xf32>
    %17 = arith.divf %15, %16 : vector<16x1xf32>
    %c0_8 = arith.constant 0 : index
    %c0_9 = arith.constant 0 : index
    %18 = memref.load %arg1[%c0_8, %c0_9] : memref<1x1xf32, #tpu.memory_space<smem>>
    %19 = vector.broadcast %18 : f32 to vector<16x1xf32>
    %20 = arith.mulf %17, %19 : vector<16x1xf32>
    %cst_10 = arith.constant 1.100000e+00 : f32
    %21 = vector.broadcast %cst_10 : f32 to vector<16x1xf32>
    %22 = arith.addf %20, %21 : vector<16x1xf32>
    %23 = arith.mulf %5, %5 : vector<16x128xf32>
    %cst_11 = arith.constant dense<0.000000e+00> : vector<16xf32>
    %24 = vector.multi_reduction <add>, %23, %cst_11 [1] : vector<16x128xf32> to vector<16xf32>
    %25 = vector.shape_cast %24 : vector<16xf32> to vector<16x1xf32>
    %26 = arith.mulf %12, %12 : vector<16x1xf32>
    %27 = arith.subf %25, %26 : vector<16x1xf32>
    %cst_12 = arith.constant 9.99999993E-9 : f32
    %28 = vector.broadcast %cst_12 : f32 to vector<16x1xf32>
    %29 = arith.maximumf %27, %28 : vector<16x1xf32>
    %30 = arith.mulf %22, %22 : vector<16x1xf32>
    %cst_13 = arith.constant 1.000000e+00 : f32
    %31 = vector.broadcast %cst_13 : f32 to vector<16x1xf32>
    %32 = arith.subf %30, %31 : vector<16x1xf32>
    %33 = tpu.reciprocal %29 {approx = true} : vector<16x1xf32> -> vector<16x1xf32>
    %34 = arith.mulf %32, %33 : vector<16x1xf32>
    %35 = math.sqrt %34 : vector<16x1xf32>
    %36 = vector.broadcast %35 : vector<16x1xf32> to vector<16x128xf32>
    %37 = arith.mulf %5, %36 : vector<16x128xf32>
    %38 = vector.shape_cast %22 : vector<16x1xf32> to vector<16x1xf32>
    %39 = vector.broadcast %38 : vector<16x1xf32> to vector<16x128xf32>
    %40 = arith.select %8, %39, %37 : vector<16x128xi1>, vector<16x128xf32>
    %c0_14 = arith.constant 0 : index
    %c0_15 = arith.constant 0 : index
    %41 = vector.load %arg5[%c0_14, %c0_15] : memref<16x128xf32, #tpu.memory_space<vmem>>, vector<16x128xf32>
    tpu.vector_store %arg5[%c0_14, %c0_15], %40 {strides = array<i32>} : memref<16x128xf32, #tpu.memory_space<vmem>>, vector<16x128xf32>,
    return
  }
  func.func @transform_0(%arg0: i32) -> (i32, i32) {
    %c0_i32 = arith.constant 0 : i32
    %c0_i32_0 = arith.constant 0 : i32
    %c0_i32_1 = arith.constant 0 : i32
    return %c0_i32, %c0_i32_0 : i32, i32
  }
  func.func @transform_1(%arg0: i32) -> (i32, i32) {
    %c0_i32 = arith.constant 0 : i32
    %c0_i32_0 = arith.constant 0 : i32
    return %arg0, %c0_i32 : i32, i32
  }
  func.func @transform_2(%arg0: i32) -> (i32, i32) {
    %c0_i32 = arith.constant 0 : i32
    %c0_i32_0 = arith.constant 0 : i32
    %c0_i32_1 = arith.constant 0 : i32
    return %c0_i32, %c0_i32_0 : i32, i32
  }
  func.func @transform_3(%arg0: i32) -> (i32, i32) {
    %c0_i32 = arith.constant 0 : i32
    %c0_i32_0 = arith.constant 0 : i32
    %c0_i32_1 = arith.constant 0 : i32
    return %c0_i32, %c0_i32_0 : i32, i32
  }
  func.func @transform_4(%arg0: i32) -> (i32, i32) {
    %c0_i32 = arith.constant 0 : i32
    %c0_i32_0 = arith.constant 0 : i32
    return %arg0, %c0_i32 : i32, i32
  }
}

</mosaic_0001>

<bundles_post_ra>
// kernel: lorentz_linear.1
= control target key start
LH: loop header
LB: loop body
LE: loop exit
PB: predicated region body
PF: predicated region fallthrough
CT: control target
= control target key end

     0   :  { %vm85_vm0 = vcmask 261120   ;;  %v127_v17 = vlaneseq  ;;  %s397_s2 = inlined_call_operand.vmem [shape: bf16[128,32], index: 2, kind: input, shape index: {}]   ;;  %s398_s3 = inlined_call_operand.vmem [shape: f32[1,128], index: 3, kind: input, shape index: {}]   ;;  %s399_s1 = inlined_call_operand.vmem [shape: bf16[16,32], index: 1, kind: input, shape index: {}]   ;;  %s400_s0 = inlined_call_operand.<no memory space> [shape: f32[1,1], index: 0, kind: input, shape index: {}]   ;;  %s401_s4 = inlined_call_operand.vmem [shape: f32[16,128], index: 4, kind: output, shape index: {}]  }
   0x1   :  { %v283_v0 = vld [vmem:[%s397_s2 + $0x38] sm:$0xff]  ;;  %v282_v2 = vld [vmem:[%s397_s2 + $0x30] sm:$0xff]  ;;  %v281_v4 = vld [vmem:[%s397_s2 + $0x28] sm:$0xff]  ;;  %v175_v48 = vstv %s400_s0 }
   0x2   :  { %v111_v1 = vsel %vm85_vm0, %v283_v0, 0  ;;  %v108_v3 = vsel %vm85_vm0, %v282_v2, 0  ;;  %v105_v5 = vsel %vm85_vm0, %v281_v4, 0  ;;  %v280_v6 = vld [vmem:[%s397_s2 + $0x20] sm:$0xff]  ;;  %v279_v8 = vld [vmem:[%s397_s2 + $0x18] sm:$0xff]  ;;  %v278_v10 = vld [vmem:[%s397_s2 + $0x10] sm:$0xff] }
   0x3   :  { %113 = vmatpush.bf16.xpose.msra.mxu0 %v111_v1  ;;  %v102_v7 = vsel %vm85_vm0, %v280_v6, 0  ;;  %v99_v9 = vsel %vm85_vm0, %v279_v8, 0  ;;  %v96_v11 = vsel %vm85_vm0, %v278_v10, 0  ;;  %v277_v12 = vld [vmem:[%s397_s2 + $0x8] sm:$0xff]  ;;  %v276_v14 = vld [vmem:[%s397_s2] sm:$0xff]  ;;  %v362_v18 = vand.u32 127, %v127_v17 }
   0x4   :  { %v93_v13 = vsel %vm85_vm0, %v277_v12, 0  ;;  %v90_v15 = vsel %vm85_vm0, %v276_v14, 0  ;;  %v275_v16 = vld [vmem:[%s399_s1] sm:$0xff] }
   0x5   :  { %v284_v19 = vld [vmem:[%s398_s3] ss:$0 sm:$0xff]  ;;  %vm129_vm1 = vcmp.eq.s32.totalorder %v362_v18, 0 }
   0xb   :  { %114 = vmatpush.bf16.xpose.msra.mxu0 %v108_v3 }
  0x13   :  { %115 = vmatpush.bf16.xpose.msra.mxu0 %v105_v5 }
  0x1b   :  { %116 = vmatpush.bf16.xpose.msra.mxu0 %v102_v7 }
  0x23   :  { %117 = vmatpush.bf16.xpose.msra.mxu0 %v99_v9 }
  0x2b   :  { %118 = vmatpush.bf16.xpose.msra.mxu0 %v96_v11 }
  0x33   :  { %119 = vmatpush.bf16.xpose.msra.mxu0 %v93_v13 }
  0x3b   :  { %120 = vmatpush.bf16.xpose.msra.mxu0 %v90_v15 }
  0x42   :  { %270 = vmatmul.msk.bf16.vlgmr.msra.gmra.mxu0 %vm85_vm0, %v275_v16 }
  0xbf   :  { %v122_v20 = vpop.f32.mrf.mxu0 }
  0xc0   :  { %v368_v21 = vadd.f32 %v284_v19, %v122_v20 }
  0xc2   :  { %v130_v22 = vsel %vm129_vm1, %v368_v21, 0.0  ;;  %v180_v23 = vmul.f32 %v368_v21, %v368_v21 }
  0xc3   :  { %132 = vadd.xlane.f32.xlu0 %v130_v22 }
  0xc4   :  { %182 = vadd.xlane.f32.xlu1 %v180_v23 }
  0xc7   :  { %v124_v24 = vpop.f32.mrf.mxu0 }
  0xc8   :  { %v375_v25 = vadd.f32 %v284_v19, %v124_v24 }
  0xca   :  { %v131_v26 = vsel %vm129_vm1, %v375_v25, 0.0  ;;  %v181_v27 = vmul.f32 %v375_v25, %v375_v25 }
  0xcb   :  { %134 = vadd.xlane.f32.xlu0 %v131_v26 }
  0xcc   :  { %184 = vadd.xlane.f32.xlu1 %v181_v27 }
 0x136   :  { %v133_v28 = vpop.xlane.xlu0 %132 }
 0x137   :  { %v271_v29 = vmul.f32 -1.442695, %v133_v28  ;;  %v183_v35 = vpop.xlane.xlu1 %182  ;;  %v186_v37 = vmul.f32 %v133_v28, %v133_v28 }
 0x139   :  { %285 = vpow2.f32 %v271_v29  ;;  %v188_v42 = vsub.f32 %v183_v35, %v186_v37 }
 0x13b   :  { %v190_v49 = vmax.f32 %v188_v42, 1e-08 }
 0x13e   :  { %v135_v30 = vpop.xlane.xlu0 %134 }
 0x13f   :  { %v286_v31 = vpop.eup %285  ;;  %v272_v32 = vmul.f32 -1.442695, %v135_v30  ;;  %v187_v50 = vmul.f32 %v135_v30, %v135_v30  ;;  %v185_v53 = vpop.xlane.xlu1 %184 }
 0x140   :  { %v142_v33 = vadd.f32 1.0, %v286_v31 }
 0x141   :  { %287 = vpow2.f32 %v272_v32  ;;  %v189_v58 = vsub.f32 %v185_v53, %v187_v50 }
 0x142   :  { %289 = vrcp.f32 %v142_v33  ;;  %v155_v41 = vand.u32 2147483648, %v142_v33  ;;  %v153_v44 = vand.u32 2147483647, %v142_v33  ;;  %vm149_vm3 = vweird.f32 %v142_v33 }
 0x143   :  { %v191_v1 = vmax.f32 %v189_v58, 1e-08 }
 0x144   :  { %v156_v47 = vor.u32 1.1754944e-38, %v155_v41  ;;  %vm154_vm5 = vcmp.eq.f32.partialorder %v153_v44, 8.507059e+37 }
 0x147   :  { %v288_v34 = vpop.eup %287 }
 0x148   :  { %v290_v36 = vpop.eup %289  ;;  %v143_v38 = vadd.f32 1.0, %v288_v34 }
 0x149   :  { %v145_v39 = vmul.f32 %v290_v36, %v142_v33  ;;  %vm150_vm2 = vweird.f32 %v290_v36 }
 0x14a   :  { %291 = vrcp.f32 %v143_v38  ;;  %vm151_vm4 = vmor %vm149_vm3, %vm150_vm2  ;;  %v170_v57 = vand.u32 2147483648, %v143_v38  ;;  %v168_v61 = vand.u32 2147483647, %v143_v38  ;;  %vm164_vm7 = vweird.f32 %v143_v38 }
 0x14b   :  { %v146_v40 = vsub.f32 1.0, %v145_v39  ;;  %293 = vrcp.f32 %v190_v49 }
 0x14c   :  { %v171_v0 = vor.u32 1.1754944e-38, %v170_v57  ;;  %vm169_vm9 = vcmp.eq.f32.partialorder %v168_v61, 8.507059e+37  ;;  %295 = vrcp.f32 %v191_v1 }
 0x14d   :  { %v147_v43 = vmul.f32 %v290_v36, %v146_v40 }
 0x14f   :  { %v148_v45 = vadd.f32 %v290_v36, %v147_v43 }
 0x150   :  { %v292_v46 = vpop.eup %291 }
 0x151   :  { %v152_v51 = vsel %vm151_vm4, %v290_v36, %v148_v45  ;;  %v160_v52 = vmul.f32 %v292_v46, %v143_v38  ;;  %vm165_vm6 = vweird.f32 %v292_v46  ;;  %v294_v4 = vpop.eup %293 }
 0x152   :  { %v157_v54 = vsel %vm154_vm5, %v156_v47, %v152_v51  ;;  %vm166_vm8 = vmor %vm164_vm7, %vm165_vm6  ;;  %v296_v10 = vpop.eup %295 }
 0x153   :  { %v176_v55 = vmul.f32 %v175_v48, %v157_v54  ;;  %v161_v56 = vsub.f32 1.0, %v160_v52 }
 0x155   :  { %v178_v59 = vadd.f32 1.1, %v176_v55  ;;  %v162_v60 = vmul.f32 %v292_v46, %v161_v56 }
 0x157   :  { %v192_v62 = vmul.f32 %v178_v59, %v178_v59  ;;  %v163_v63 = vadd.f32 %v292_v46, %v162_v60 }
 0x159   :  { %v273_v2 = vadd.f32 -1.0, %v192_v62  ;;  %v167_v3 = vsel %vm166_vm8, %v292_v46, %v163_v63 }
 0x15a   :  { %v172_v5 = vsel %vm169_vm9, %v171_v0, %v167_v3 }
 0x15b   :  { %v198_v6 = vmul.f32 %v294_v4, %v273_v2  ;;  %v177_v7 = vmul.f32 %v175_v48, %v172_v5 }
 0x15d   :  { %297 = vrsqrt.f32 %v198_v6  ;;  %v179_v8 = vadd.f32 1.1, %v177_v7  ;;  %vm207_vm10 = vcmp.eq.f32.partialorder %v198_v6, inf  ;;  %v210_v24 = vand.u32 2147483648, %v198_v6 }
 0x15e   :  { %vm209_vm11 = vcmp.eq.f32.partialorder %v198_v6, 0.0 }
 0x15f   :  { %v193_v9 = vmul.f32 %v179_v8, %v179_v8 }
 0x161   :  { %v274_v11 = vadd.f32 -1.0, %v193_v9 }
 0x163   :  { %v298_v12 = vpop.eup %297  ;;  %v199_v14 = vmul.f32 %v296_v10, %v274_v11 }
 0x164   :  { %v201_v13 = vmul.f32 %v298_v12, %v198_v6 }
 0x165   :  { %299 = vrsqrt.f32 %v199_v14  ;;  %vm219_vm12 = vcmp.eq.f32.partialorder %v199_v14, inf  ;;  %v222_v35 = vand.u32 2147483648, %v199_v14  ;;  %vm221_vm13 = vcmp.eq.f32.partialorder %v199_v14, 0.0 }
 0x166   :  { %v202_v15 = vmul.f32 %v298_v12, %v201_v13 }
 0x168   :  { %v203_v16 = vmul.f32 0.5, %v202_v15 }
 0x16a   :  { %v204_v17 = vsub.f32 1.5, %v203_v16 }
 0x16b   :  { %v300_v19 = vpop.eup %299 }
 0x16c   :  { %v205_v20 = vmul.f32 %v298_v12, %v204_v17  ;;  %v213_v22 = vmul.f32 %v300_v19, %v199_v14 }
 0x16e   :  { %v206_v23 = vmul.f32 %v205_v20, %v198_v6  ;;  %v214_v26 = vmul.f32 %v300_v19, %v213_v22 }
 0x170   :  { %v208_v27 = vsel %vm207_vm10, %v198_v6, %v206_v23  ;;  %v215_v29 = vmul.f32 0.5, %v214_v26 }
 0x171   :  { %v211_v28 = vsel %vm209_vm11, %v210_v24, %v208_v27 }
 0x172   :  { %v224_v30 = vmul.f32 %v211_v28, %v368_v21  ;;  %v216_v31 = vsub.f32 1.5, %v215_v29 }
 0x174   :  { %v226_v32 = vsel %vm129_vm1, %v178_v59, %v224_v30  ;;  %v217_v33 = vmul.f32 %v300_v19, %v216_v31 }
 0x175   :  { %228 = vst [vmem:[%s401_s4] sm:$0xff] %v226_v32 }
 0x176   :  { %v218_v34 = vmul.f32 %v217_v33, %v199_v14 }
 0x178   :  { %v220_v36 = vsel %vm219_vm12, %v199_v14, %v218_v34 }
 0x179   :  { %v223_v37 = vsel %vm221_vm13, %v222_v35, %v220_v36 }
 0x17a   :  { %v225_v38 = vmul.f32 %v223_v37, %v375_v25 }
 0x17c   :  { %v227_v21 = vsel %vm129_vm1, %v179_v8, %v225_v38 }
 0x17d   :  { %229 = vst [vmem:[%s401_s4 + $0x8] sm:$0xff] %v227_v21 }

</bundles_post_ra>
